<compile_context>
chip_gen: v7x
topology: tpu7x:2x2x1
jax: 0.10.0
libtpu: 0.0.40
codegen_flags: <defaults>
</compile_context>

<pallas_src>
import functools
from typing import NamedTuple

import jax
import jax.numpy as jnp
from jax.experimental import pallas as pl
from jax.experimental.pallas import tpu as pltpu
from jax.scipy.linalg import block_diag


def _round_up(x, m):
    return ((x + m - 1) // m) * m


class PackDims(NamedTuple):
    N: int
    Din: int
    H1P: int
    H2P: int
    MB: int
    S: int
    R: int


# ----------------------------- Pallas kernel -------------------------------

def _fused_mlp_kernel(x_ref, w1_ref, b1_ref, w2_ref, b2_ref, w3_ref, b3_ref,
                      clamp_ref, out_ref, *, mean_block, bf16_eup):
    """One grid step = one batch tile through the whole (packed) ensemble MLP."""
    bf16 = jnp.bfloat16
    f32 = jnp.float32

    def swish(h):
        if bf16_eup:   # v6e/v7x only: bf16 EUP path ~2x transcendental throughput
            return h * jax.nn.sigmoid(h.astype(bf16)).astype(f32)
        return h * jax.nn.sigmoid(h)

    def softplus(v):
        if bf16_eup:
            return jax.nn.softplus(v.astype(bf16)).astype(f32)
        return jax.nn.softplus(v)

    x = x_ref[...].astype(bf16)                                     # [TB, Din]

    # layer 1 + swish (all N members at once: output columns are N*H1 packed)
    h = jnp.dot(x, w1_ref[...], preferred_element_type=f32) + b1_ref[...]
    h = swish(h)

    # layer 2 + swish (block-diagonal -> per-member mixing only)
    h = jnp.dot(h.astype(bf16), w2_ref[...], preferred_element_type=f32) + b2_ref[...]
    h = swish(h)

    # output layer: columns [0:MB) = packed means, [MB:2MB) = packed logvars
    y = jnp.dot(h.astype(bf16), w3_ref[...], preferred_element_type=f32) + b3_ref[...]

    y_mean = y[:, :mean_block]                                      # 128-aligned
    y_lv = y[:, mean_block:]

    # soft clamping of logvars only:
    #   lv = max - softplus(max - lv);  lv = min + softplus(lv - min)
    maxv = clamp_ref[0:1, :]                                        # [1, MB]
    minv = clamp_ref[1:2, :]
    lv = maxv - softplus(maxv - y_lv)
    lv = minv + softplus(lv - minv)

    out_ref[:, :mean_block] = y_mean.astype(out_ref.dtype)
    out_ref[:, mean_block:] = lv.astype(out_ref.dtype)


# ----------------------------- weight packing -------------------------------

def pack_params(params):
    """Pack per-network weights into block-diagonal, lane-dense matrices.

    Matmul operands (W1/W2/W3) are stored in bf16 (MXU-native); biases and the
    clamp constants stay f32.  Call ONCE per weight update, not per forward.
    """
    (w1, b1, w2, b2, w3, b3,
     max_diff_lv, min_diff_lv, max_rew_lv, min_rew_lv,
     state_dim, reward_dim) = params

    N, Din, H1 = w1.shape
    H2 = w2.shape[-1]
    S, R = state_dim, reward_dim
    SR = S + R

    H1P = _round_up(N * H1, 128)
    H2P = _round_up(N * H2, 128)
    MB = _round_up(N * SR, 128)          # mean block width == logvar block width
    f32, bf16 = jnp.float32, jnp.bfloat16

    def pad_to(a, shape):
        return jnp.pad(a, [(0, t - s) for s, t in zip(a.shape, shape)])

    # ---- layer 1: concat member outputs along the column axis (K stays Din) ----
    w1_cat = pad_to(jnp.transpose(w1, (1, 0, 2)).reshape(Din, N * H1), (Din, H1P))
    b1_cat = pad_to(b1.reshape(1, N * H1), (1, H1P))

    # ---- layer 2: block-diagonal ----
    w2_bd = pad_to(block_diag(*w2), (H1P, H2P))
    b2_cat = pad_to(b2.reshape(1, N * H2), (1, H2P))

    # ---- layer 3: block-diagonal with mean / logvar columns split ----
    # per-network W3 column layout (reference):
    #   [0:S) diff means | [S:2S) diff logvars | [2S:2S+R) rew means | [2S+R:) rew logvars
    w3_mean_n = jnp.concatenate([w3[..., :S], w3[..., 2 * S:2 * S + R]], axis=-1)
    w3_lv_n = jnp.concatenate([w3[..., S:2 * S], w3[..., 2 * S + R:]], axis=-1)
    w3_mean = pad_to(block_diag(*w3_mean_n), (H2P, MB))
    w3_lv = pad_to(block_diag(*w3_lv_n), (H2P, MB))
    w3_cat = jnp.concatenate([w3_mean, w3_lv], axis=-1)             # [H2P, 2*MB]

    b3_mean = pad_to(jnp.concatenate([b3[:, :S], b3[:, 2 * S:2 * S + R]],
                                     axis=-1).reshape(1, N * SR), (1, MB))
    b3_lv = pad_to(jnp.concatenate([b3[:, S:2 * S], b3[:, 2 * S + R:]],
                                   axis=-1).reshape(1, N * SR), (1, MB))
    b3_cat = jnp.concatenate([b3_mean, b3_lv], axis=-1)             # [1, 2*MB]

    # ---- clamp constants for the logvar block, merged into one (2, MB) array ----
    row_max = jnp.concatenate([max_diff_lv, max_rew_lv], axis=-1)   # [1, S+R]
    row_min = jnp.concatenate([min_diff_lv, min_rew_lv], axis=-1)
    maxv = pad_to(jnp.tile(row_max, (1, N)), (1, MB))
    minv = pad_to(jnp.tile(row_min, (1, N)), (1, MB))
    clamp = jnp.concatenate([maxv, minv], axis=0).astype(f32)       # [2, MB]

    packed = (w1_cat.astype(bf16), b1_cat.astype(f32),
              w2_bd.astype(bf16), b2_cat.astype(f32),
              w3_cat.astype(bf16), b3_cat.astype(f32),
              clamp)
    dims = PackDims(N=int(N), Din=int(Din), H1P=int(H1P), H2P=int(H2P),
                    MB=int(MB), S=int(S), R=int(R))
    return packed, dims


# ----------------------------- forward wrapper -------------------------------

@functools.partial(jax.jit,
                   static_argnames=("dims", "bf16_eup", "max_batch_tile"))
def ensemble_forward(states, actions, packed, *, dims, bf16_eup=False,
                     max_batch_tile=512):
    """Forward pass of EnsembleRDynamics (all networks fused in one kernel).

    Returns:
      diff_state_means   [N, B, state_dim]
      diff_state_logvars [N, B, state_dim]
      reward_means       [N, B, reward_dim]
      reward_logvars     [N, B, reward_dim]
    """
    w1_cat, b1_cat, w2_bd, b2_cat, w3_cat, b3_cat, clamp = packed
    N, Din = dims.N, dims.Din
    H1P, H2P, MB = dims.H1P, dims.H2P, dims.MB
    S, R = dims.S, dims.R
    SR = S + R
    Dout2 = 2 * MB

    B = states.shape[0]

    # Batch tile: >=4 grid steps once B is large (keeps both v7x TensorCores
    # busy, pipelines writeback everywhere), floor of 256 rows against
    # per-step overhead, cap at max_batch_tile for VMEM.
    TILE_FLOOR = 256
    TB = min(_round_up(B, 8),
             max(_round_up(pl.cdiv(B, 4), 8), TILE_FLOOR),
             max_batch_tile)
    grid = (pl.cdiv(B, TB),)

    # x stays at its true feature width (no 128-lane padding of the HBM
    # stream); the ragged last batch tile is handled by Pallas block masking
    # (padded rows never contaminate valid rows and are masked on store).
    x = jnp.concatenate([states, actions], axis=-1).astype(jnp.float32)

    # VMEM budget: pipelined I/O blocks (2 buffers each) + in-kernel f32
    # intermediates (h, y and their bf16 copies) with a 2x safety factor;
    # never clamped below the computed need.
    io_bytes = (TB * Din * 4
                + Din * H1P * 2 + H1P * 4
                + H1P * H2P * 2 + H2P * 4
                + H2P * Dout2 * 2 + Dout2 * 4
                + 2 * MB * 4
                + TB * Dout2 * 4)
    inter_bytes = TB * (H1P + H2P + Dout2) * 4
    vmem_bytes = 2 * io_bytes + 2 * inter_bytes + (2 << 20)
    vmem_bytes = int(min(max(vmem_bytes, 8 << 20), 64 << 20))

    kernel = functools.partial(_fused_mlp_kernel, mean_block=MB,
                               bf16_eup=bf16_eup)

    out = pl.pallas_call(
        kernel,
        out_shape=jax.ShapeDtypeStruct((B, Dout2), jnp.float32),
        grid_spec=pl.GridSpec(
            grid=grid,
            in_specs=[
                pl.BlockSpec((TB, Din), lambda i: (i, 0)),      # x (batch-tiled)
                # Weights: constant index_maps -> fetched once, resident
                # across batch tiles (~100 KiB total in bf16).
                pl.BlockSpec((Din, H1P), lambda i: (0, 0)),     # W1 packed (bf16)
                pl.BlockSpec((1, H1P), lambda i: (0, 0)),       # b1
                pl.BlockSpec((H1P, H2P), lambda i: (0, 0)),     # W2 block-diag (bf16)
                pl.BlockSpec((1, H2P), lambda i: (0, 0)),       # b2
                pl.BlockSpec((H2P, Dout2), lambda i: (0, 0)),   # W3 [means | logvars] (bf16)
                pl.BlockSpec((1, Dout2), lambda i: (0, 0)),     # b3
                pl.BlockSpec((2, MB), lambda i: (0, 0)),        # fused max/min clamp
            ],
            out_specs=pl.BlockSpec((TB, Dout2), lambda i: (i, 0)),
        ),
        compiler_params=pltpu.CompilerParams(
            dimension_semantics=("parallel",),
            vmem_limit_bytes=vmem_bytes),
    )(x, w1_cat, b1_cat, w2_bd, b2_cat, w3_cat, b3_cat, clamp)

    # unpack: tight per-network packing -> single reshape, padding columns dropped
    means = out[:, :N * SR].reshape(B, N, SR).transpose(1, 0, 2)        # [N, B, S+R]
    lvs = out[:, MB:MB + N * SR].reshape(B, N, SR).transpose(1, 0, 2)   # [N, B, S+R]
    return {
        "diff_state_means":   means[..., :S],
        "diff_state_logvars": lvs[..., :S],
        "reward_means":       means[..., S:],
        "reward_logvars":     lvs[..., S:],
    }


# ----------------------------- reference (plain JAX) ------------------------

def ensemble_forward_ref(states, actions, params):
    (w1, b1, w2, b2, w3, b3,
     max_diff_lv, min_diff_lv, max_rew_lv, min_rew_lv,
     state_dim, reward_dim) = params
    x = jnp.concatenate([states, actions], axis=-1)
    S, R = state_dim, reward_dim

    def one_net(w1n, b1n, w2n, b2n, w3n, b3n):
        h = x @ w1n + b1n
        h = h * jax.nn.sigmoid(h)
        h = h @ w2n + b2n
        h = h * jax.nn.sigmoid(h)
        return h @ w3n + b3n

    y = jax.vmap(one_net)(w1, b1, w2, b2, w3, b3)             # [N, B, Dout]

    dsm = y[..., :S]
    dsl = y[..., S:2 * S]
    rm = y[..., 2 * S:2 * S + R]
    rl = y[..., 2 * S + R:]

    dsl = max_diff_lv - jax.nn.softplus(max_diff_lv - dsl)
    dsl = min_diff_lv + jax.nn.softplus(dsl - min_diff_lv)
    rl = max_rew_lv - jax.nn.softplus(max_rew_lv - rl)
    rl = min_rew_lv + jax.nn.softplus(rl - min_rew_lv)

    return {"diff_state_means": dsm, "diff_state_logvars": dsl,
            "reward_means": rm, "reward_logvars": rl}


# ----------------------------- parameter setup ------------------------------

def init_params(key, state_dim, action_dim, reward_dim, hidden_dims, num_networks):
    assert len(hidden_dims) == 2  # fixed-depth MLP for this synthetic kernel
    Din = state_dim + action_dim
    H1, H2 = hidden_dims
    Dout = 2 * state_dim + 2 * reward_dim  # output_state_dim + 2*reward_dim

    ks = jax.random.split(key, 3)

    def trunc_init(k, shape, fan_in):
        # truncated-normal weight init (std = 1 / (2*sqrt(fan_in))), zero bias
        std = 1.0 / (2.0 * jnp.sqrt(float(fan_in)))
        return std * jax.random.truncated_normal(k, -2.0, 2.0, shape, jnp.float32)

    w1 = trunc_init(ks[0], (num_networks, Din, H1), Din)
    b1 = jnp.zeros((num_networks, H1), jnp.float32)
    w2 = trunc_init(ks[1], (num_networks, H1, H2), H1)
    b2 = jnp.zeros((num_networks, H2), jnp.float32)
    w3 = trunc_init(ks[2], (num_networks, H2, Dout), H2)
    b3 = jnp.zeros((num_networks, Dout), jnp.float32)

    max_diff_lv = jnp.ones((1, state_dim), jnp.float32) / 2.0
    min_diff_lv = -jnp.ones((1, state_dim), jnp.float32) * 10.0
    max_rew_lv = jnp.ones((1, reward_dim), jnp.float32) / 2.0
    min_rew_lv = -jnp.ones((1, reward_dim), jnp.float32) * 10.0

    return (w1, b1, w2, b2, w3, b3,
            max_diff_lv, min_diff_lv, max_rew_lv, min_rew_lv,
            state_dim, reward_dim)


# ----------------------------- main -----------------------------------------

if __name__ == "__main__":
    state_dim, action_dim, reward_dim = 16, 8, 1
    hidden_dims = [32, 32]
    num_networks = 4
    batch = 8

    key = jax.random.PRNGKey(0)
    k_states, k_actions, k_params = jax.random.split(key, 3)

    states = jax.random.normal(k_states, (batch, state_dim), jnp.float32)
    actions = jax.random.normal(k_actions, (batch, action_dim), jnp.float32)
    params = init_params(k_params, state_dim, action_dim, reward_dim,
                         hidden_dims, num_networks)

    # Pack once (per weight update in a real loop); forward wrapper is jitted.
    packed, dims = pack_params(params)
    packed = jax.block_until_ready(packed)

    # TODO(synk): predict()'s elite-index sampling / Normal sampling and the
    # snapshot bookkeeping are host-side control flow, not kernel work.
    out = ensemble_forward(states, actions, packed, dims=dims)
    out = jax.block_until_ready(out)

    ref = ensemble_forward_ref(states, actions, params)
    for k in out:
        assert out[k].shape == ref[k].shape, (k, out[k].shape, ref[k].shape)
        assert jnp.allclose(out[k], ref[k], rtol=1e-2, atol=1e-2), k

    print("KERNEL_OK")
</pallas_src>

<mosaic_0001>
module attributes {stable_mosaic.version = 11 : i64} {
  func.func @_fused_mlp_kernel(%arg0: i32, %arg1: memref<8x24xf32, #tpu.memory_space<vmem>>, %arg2: memref<24x128xbf16, #tpu.memory_space<vmem>>, %arg3: memref<1x128xf32, #tpu.memory_space<vmem>>, %arg4: memref<128x128xbf16, #tpu.memory_space<vmem>>, %arg5: memref<1x128xf32, #tpu.memory_space<vmem>>, %arg6: memref<128x256xbf16, #tpu.memory_space<vmem>>, %arg7: memref<1x256xf32, #tpu.memory_space<vmem>>, %arg8: memref<2x128xf32, #tpu.memory_space<vmem>>, %arg9: memref<8x256xf32, #tpu.memory_space<vmem>>) attributes {dimension_semantics = [#tpu.dimension_semantics<parallel>], iteration_bounds = array<i64: 1>, scalar_prefetch = 0 : i64, scratch_operands = 0 : i64, tpu.core_type = #tpu.core_type<tc>, window_params = [{transform_indices = @transform_0, window_bounds = array<i64: 8, 24>}, {pipeline_mode = #tpu.pipeline_mode<synchronous>, transform_indices = @transform_1, window_bounds = array<i64: 24, 128>}, {pipeline_mode = #tpu.pipeline_mode<synchronous>, transform_indices = @transform_2, window_bounds = array<i64: 1, 128>}, {pipeline_mode = #tpu.pipeline_mode<synchronous>, transform_indices = @transform_3, window_bounds = array<i64: 128, 128>}, {pipeline_mode = #tpu.pipeline_mode<synchronous>, transform_indices = @transform_4, window_bounds = array<i64: 1, 128>}, {pipeline_mode = #tpu.pipeline_mode<synchronous>, transform_indices = @transform_5, window_bounds = array<i64: 128, 256>}, {pipeline_mode = #tpu.pipeline_mode<synchronous>, transform_indices = @transform_6, window_bounds = array<i64: 1, 256>}, {pipeline_mode = #tpu.pipeline_mode<synchronous>, transform_indices = @transform_7, window_bounds = array<i64: 2, 128>}, {transform_indices = @transform_8, window_bounds = array<i64: 8, 256>}]} {
    %c0 = arith.constant 0 : index
    %c0_0 = arith.constant 0 : index
    %0 = vector.load %arg1[%c0, %c0_0] : memref<8x24xf32, #tpu.memory_space<vmem>>, vector<8x24xf32>
    %1 = arith.truncf %0 : vector<8x24xf32> to vector<8x24xbf16>
    %c0_1 = arith.constant 0 : index
    %c0_2 = arith.constant 0 : index
    %2 = vector.load %arg2[%c0_1, %c0_2] : memref<24x128xbf16, #tpu.memory_space<vmem>>, vector<24x128xbf16>
    %cst = arith.constant dense<0.000000e+00> : vector<8x128xf32>
    %3 = tpu.matmul %1, %2, %cst {dimension_numbers = #tpu.dot_dimension_numbers<[1], [0], [0], [1], [0, 0, 1, 1], [], []>} : vector<8x24xbf16>, vector<24x128xbf16>, vector<8x128xf32> -> vector<8x128xf32>
    %c0_3 = arith.constant 0 : index
    %c0_4 = arith.constant 0 : index
    %4 = vector.load %arg3[%c0_3, %c0_4] : memref<1x128xf32, #tpu.memory_space<vmem>>, vector<1x128xf32>
    %5 = vector.broadcast %4 : vector<1x128xf32> to vector<8x128xf32>
    %6 = arith.addf %3, %5 : vector<8x128xf32>
    %7 = arith.negf %6 : vector<8x128xf32>
    %8 = math.exp %7 : vector<8x128xf32>
    %cst_5 = arith.constant 1.000000e+00 : f32
    %9 = vector.broadcast %cst_5 : f32 to vector<8x128xf32>
    %10 = arith.addf %9, %8 : vector<8x128xf32>
    %11 = arith.divf %9, %10 : vector<8x128xf32>
    %12 = arith.mulf %6, %11 : vector<8x128xf32>
    %13 = arith.truncf %12 : vector<8x128xf32> to vector<8x128xbf16>
    %c0_6 = arith.constant 0 : index
    %c0_7 = arith.constant 0 : index
    %14 = vector.load %arg4[%c0_6, %c0_7] : memref<128x128xbf16, #tpu.memory_space<vmem>>, vector<128x128xbf16>
    %cst_8 = arith.constant dense<0.000000e+00> : vector<8x128xf32>
    %15 = tpu.matmul %13, %14, %cst_8 {dimension_numbers = #tpu.dot_dimension_numbers<[1], [0], [0], [1], [0, 0, 1, 1], [], []>} : vector<8x128xbf16>, vector<128x128xbf16>, vector<8x128xf32> -> vector<8x128xf32>
    %c0_9 = arith.constant 0 : index
    %c0_10 = arith.constant 0 : index
    %16 = vector.load %arg5[%c0_9, %c0_10] : memref<1x128xf32, #tpu.memory_space<vmem>>, vector<1x128xf32>
    %17 = vector.broadcast %16 : vector<1x128xf32> to vector<8x128xf32>
    %18 = arith.addf %15, %17 : vector<8x128xf32>
    %19 = arith.negf %18 : vector<8x128xf32>
    %20 = math.exp %19 : vector<8x128xf32>
    %cst_11 = arith.constant 1.000000e+00 : f32
    %21 = vector.broadcast %cst_11 : f32 to vector<8x128xf32>
    %22 = arith.addf %21, %20 : vector<8x128xf32>
    %23 = arith.divf %21, %22 : vector<8x128xf32>
    %24 = arith.mulf %18, %23 : vector<8x128xf32>
    %25 = arith.truncf %24 : vector<8x128xf32> to vector<8x128xbf16>
    %c0_12 = arith.constant 0 : index
    %c0_13 = arith.constant 0 : index
    %26 = vector.load %arg6[%c0_12, %c0_13] : memref<128x256xbf16, #tpu.memory_space<vmem>>, vector<128x256xbf16>
    %cst_14 = arith.constant dense<0.000000e+00> : vector<8x256xf32>
    %27 = tpu.matmul %25, %26, %cst_14 {dimension_numbers = #tpu.dot_dimension_numbers<[1], [0], [0], [1], [0, 0, 1, 1], [], []>} : vector<8x128xbf16>, vector<128x256xbf16>, vector<8x256xf32> -> vector<8x256xf32>
    %c0_15 = arith.constant 0 : index
    %c0_16 = arith.constant 0 : index
    %28 = vector.load %arg7[%c0_15, %c0_16] : memref<1x256xf32, #tpu.memory_space<vmem>>, vector<1x256xf32>
    %29 = vector.broadcast %28 : vector<1x256xf32> to vector<8x256xf32>
    %30 = arith.addf %27, %29 : vector<8x256xf32>
    %31 = vector.extract_strided_slice %30 {offsets = [0, 0], sizes = [8, 128], strides = [1, 1]} : vector<8x256xf32> to vector<8x128xf32>
    %32 = vector.extract_strided_slice %30 {offsets = [0, 128], sizes = [8, 128], strides = [1, 1]} : vector<8x256xf32> to vector<8x128xf32>
    %c0_17 = arith.constant 0 : index
    %c0_18 = arith.constant 0 : index
    %33 = vector.load %arg8[%c0_17, %c0_18] : memref<2x128xf32, #tpu.memory_space<vmem>>, vector<1x128xf32>
    %c1 = arith.constant 1 : index
    %c0_19 = arith.constant 0 : index
    %34 = vector.load %arg8[%c1, %c0_19] : memref<2x128xf32, #tpu.memory_space<vmem>>, vector<1x128xf32>
    %35 = vector.broadcast %33 : vector<1x128xf32> to vector<8x128xf32>
    %36 = arith.subf %35, %32 : vector<8x128xf32>
    %cst_20 = arith.constant 0.000000e+00 : f32
    %37 = vector.broadcast %cst_20 : f32 to vector<8x128xf32>
    %38 = arith.maximumf %36, %37 : vector<8x128xf32>
    %39 = vector.broadcast %cst_20 : f32 to vector<8x128xf32>
    %40 = arith.subf %36, %39 : vector<8x128xf32>
    %41 = arith.cmpf one, %40, %40 : vector<8x128xf32>
    %42 = vector.broadcast %cst_20 : f32 to vector<8x128xf32>
    %43 = arith.addf %36, %42 : vector<8x128xf32>
    %44 = math.absf %40 : vector<8x128xf32>
    %cst_21 = arith.constant 0.000000e+00 : f32
    %45 = vector.broadcast %cst_21 : f32 to vector<8x128xf32>
    %46 = arith.subf %45, %44 : vector<8x128xf32>
    %47 = math.exp %46 : vector<8x128xf32>
    %48 = math.log1p %47 : vector<8x128xf32>
    %49 = arith.addf %38, %48 : vector<8x128xf32>
    %50 = arith.select %41, %43, %49 : vector<8x128xi1>, vector<8x128xf32>
    %51 = vector.broadcast %33 : vector<1x128xf32> to vector<8x128xf32>
    %52 = arith.subf %51, %50 : vector<8x128xf32>
    %53 = vector.broadcast %34 : vector<1x128xf32> to vector<8x128xf32>
    %54 = arith.subf %52, %53 : vector<8x128xf32>
    %cst_22 = arith.constant 0.000000e+00 : f32
    %55 = vector.broadcast %cst_22 : f32 to vector<8x128xf32>
    %56 = arith.maximumf %54, %55 : vector<8x128xf32>
    %57 = vector.broadcast %cst_22 : f32 to vector<8x128xf32>
    %58 = arith.subf %54, %57 : vector<8x128xf32>
    %59 = arith.cmpf one, %58, %58 : vector<8x128xf32>
    %60 = vector.broadcast %cst_22 : f32 to vector<8x128xf32>
    %61 = arith.addf %54, %60 : vector<8x128xf32>
    %62 = math.absf %58 : vector<8x128xf32>
    %cst_23 = arith.constant 0.000000e+00 : f32
    %63 = vector.broadcast %cst_23 : f32 to vector<8x128xf32>
    %64 = arith.subf %63, %62 : vector<8x128xf32>
    %65 = math.exp %64 : vector<8x128xf32>
    %66 = math.log1p %65 : vector<8x128xf32>
    %67 = arith.addf %56, %66 : vector<8x128xf32>
    %68 = arith.select %59, %61, %67 : vector<8x128xi1>, vector<8x128xf32>
    %69 = vector.broadcast %34 : vector<1x128xf32> to vector<8x128xf32>
    %70 = arith.addf %69, %68 : vector<8x128xf32>
    %c0_24 = arith.constant 0 : index
    %c0_25 = arith.constant 0 : index
    %71 = vector.load %arg9[%c0_24, %c0_25] : memref<8x256xf32, #tpu.memory_space<vmem>>, vector<8x128xf32>
    tpu.vector_store %arg9[%c0_24, %c0_25], %31 {strides = array<i32>} : memref<8x256xf32, #tpu.memory_space<vmem>>, vector<8x128xf32>,
    %c0_26 = arith.constant 0 : index
    %c128 = arith.constant 128 : index
    %72 = vector.load %arg9[%c0_26, %c128] : memref<8x256xf32, #tpu.memory_space<vmem>>, vector<8x128xf32>
    tpu.vector_store %arg9[%c0_26, %c128], %70 {strides = array<i32>} : memref<8x256xf32, #tpu.memory_space<vmem>>, vector<8x128xf32>,
    return
  }
  func.func @transform_0(%arg0: i32) -> (i32, i32) {
    %c0_i32 = arith.constant 0 : i32
    %c0_i32_0 = arith.constant 0 : i32
    return %arg0, %c0_i32 : i32, i32
  }
  func.func @transform_1(%arg0: i32) -> (i32, i32) {
    %c0_i32 = arith.constant 0 : i32
    %c0_i32_0 = arith.constant 0 : i32
    %c0_i32_1 = arith.constant 0 : i32
    return %c0_i32, %c0_i32_0 : i32, i32
  }
  func.func @transform_2(%arg0: i32) -> (i32, i32) {
    %c0_i32 = arith.constant 0 : i32
    %c0_i32_0 = arith.constant 0 : i32
    %c0_i32_1 = arith.constant 0 : i32
    return %c0_i32, %c0_i32_0 : i32, i32
  }
  func.func @transform_3(%arg0: i32) -> (i32, i32) {
    %c0_i32 = arith.constant 0 : i32
    %c0_i32_0 = arith.constant 0 : i32
    %c0_i32_1 = arith.constant 0 : i32
    return %c0_i32, %c0_i32_0 : i32, i32
  }
  func.func @transform_4(%arg0: i32) -> (i32, i32) {
    %c0_i32 = arith.constant 0 : i32
    %c0_i32_0 = arith.constant 0 : i32
    %c0_i32_1 = arith.constant 0 : i32
    return %c0_i32, %c0_i32_0 : i32, i32
  }
  func.func @transform_5(%arg0: i32) -> (i32, i32) {
    %c0_i32 = arith.constant 0 : i32
    %c0_i32_0 = arith.constant 0 : i32
    %c0_i32_1 = arith.constant 0 : i32
    return %c0_i32, %c0_i32_0 : i32, i32
  }
  func.func @transform_6(%arg0: i32) -> (i32, i32) {
    %c0_i32 = arith.constant 0 : i32
    %c0_i32_0 = arith.constant 0 : i32
    %c0_i32_1 = arith.constant 0 : i32
    return %c0_i32, %c0_i32_0 : i32, i32
  }
  func.func @transform_7(%arg0: i32) -> (i32, i32) {
    %c0_i32 = arith.constant 0 : i32
    %c0_i32_0 = arith.constant 0 : i32
    %c0_i32_1 = arith.constant 0 : i32
    return %c0_i32, %c0_i32_0 : i32, i32
  }
  func.func @transform_8(%arg0: i32) -> (i32, i32) {
    %c0_i32 = arith.constant 0 : i32
    %c0_i32_0 = arith.constant 0 : i32
    return %arg0, %c0_i32 : i32, i32
  }
}

</mosaic_0001>

<bundles_post_ra>
// kernel: ensemble_forward.1
= control target key start
LH: loop header
LB: loop body
LE: loop exit
PB: predicated region body
PF: predicated region fallthrough
CT: control target
= control target key end

     0   :  { %13 = vsyncpa [#allocation3], 0  ;;  %s749_s0 = inlined_call_operand.vmem [shape: f32[8,24], index: 0, kind: input, shape index: {}]   ;;  %s750_s1 = inlined_call_operand.vmem [shape: bf16[24,128], index: 1, kind: input, shape index: {}]   ;;  %s751_s2 = inlined_call_operand.vmem [shape: f32[1,128], index: 2, kind: input, shape index: {}]   ;;  %s752_s3 = inlined_call_operand.hbm [shape: bf16[128,128], index: 3, kind: input, shape index: {}]   ;;  %s753_s4 = inlined_call_operand.vmem [shape: f32[1,128], index: 4, kind: input, shape index: {}]   ;;  %s754_s5 = inlined_call_operand.hbm [shape: bf16[128,256], index: 5, kind: input, shape index: {}]   ;;  %s755_s6 = inlined_call_operand.vmem [shape: f32[1,256], index: 6, kind: input, shape index: {}]   ;;  %s756_s7 = inlined_call_operand.vmem [shape: f32[2,128], index: 7, kind: input, shape index: {}]   ;;  %s757_s8 = inlined_call_operand.vmem [shape: f32[8,256], index: 8, kind: output, shape index: {}]  }
   0x1   :  { %14 = vsyncpa [#allocation5], 0  ;;  %s641_s27 = smov [#allocation2]   ;;  %s593_s9 = scalar_lea.hbm %s752_s3, 1024 }
   0x2   :  { %s26_s28 = sshll.u32 %s641_s27, 4  ;;  %p594_p0 = scmp.ne.s32.totalorder %s752_s3, %s593_s9  ;;  %s27_s28 = int_to_ptr.vmem [resolvable:$true] %s26_s28 }
   0x3   :  { %p597_p1 = scmp.lt.u32.totalorder %s593_s9, %s752_s3 }
   0x5   :  { %p599_p2 = pnand %p597_p1, %p594_p0 }
   0x7   :  { %602 = shalt.err (!%p599_p2)
}
   0x8   :  { %s603_s14 = scalar_lea.vmem %s27_s28, 1024  ;;  %p608_p4 = scmp.lt.s32.totalorder %s27_s28, %s27_s28 }
   0x9   :  { %p604_p3 = scmp.ne.s32.totalorder %s27_s28, %s603_s14  ;;  %p609_p5 = scmp.lt.s32.totalorder %s603_s14, %s603_s14 }
   0xb   :  { %p610_p6 = por %p609_p5, %p608_p4 }
   0xd   :  { %p611_p7 = pnand %p610_p6, %p604_p3 }
   0xf   :  { %614 = shalt.err (!%p611_p7)
}
  0x10   :  { %s642_s15 = smov 64   ;;  %s643_s16 = smov 4  }
  0x11   :  { %32 = dma.hbm_to_vmem [thread:$0]  %s752_s3, 1024, %s27_s28, [#allocation3], %s642_s15, %s642_s15, %s643_s16  }
  0x12   :  { %s644_s19 = smov [#allocation4]   ;;  %s615_s23 = scalar_lea.hbm %s754_s5, 2048 }
  0x13   :  { %s40_s20 = sshll.u32 %s644_s19, 4  ;;  %p616_p8 = scmp.ne.s32.totalorder %s754_s5, %s615_s23  ;;  %s41_s20 = int_to_ptr.vmem [resolvable:$true] %s40_s20 }
  0x14   :  { %p619_p9 = scmp.lt.u32.totalorder %s615_s23, %s754_s5 }
  0x16   :  { %p621_p10 = pnand %p619_p9, %p616_p8 }
  0x18   :  { %624 = shalt.err (!%p621_p10)
}
  0x19   :  { %s625_s29 = scalar_lea.vmem %s41_s20, 2048  ;;  %p630_p12 = scmp.lt.s32.totalorder %s41_s20, %s41_s20 }
  0x1a   :  { %p626_p11 = scmp.ne.s32.totalorder %s41_s20, %s625_s29  ;;  %p631_p13 = scmp.lt.s32.totalorder %s625_s29, %s625_s29 }
  0x1c   :  { %p632_p0 = por %p631_p13, %p630_p12 }
  0x1e   :  { %p633_p1 = pnand %p632_p0, %p626_p11 }
  0x20   :  { %636 = shalt.err (!%p633_p1)
}
  0x21   :  { %s645_s3 = smov 128   ;;  %s646_s28 = smov 8  }
  0x22   :  { %46 = dma.hbm_to_vmem [thread:$0]  %s754_s5, 2048, %s41_s20, [#allocation5], %s645_s3, %s645_s3, %s646_s28  }
  0x23   :  { %637 = dma.done.wait [#allocation3], 1024  }
  0x24   :  { %638 = vsyncadd [#allocation3], 4294966272 }
  0x25   :  { %639 = dma.done.wait [#allocation5], 2048  }
  0x26   :  { %640 = vsyncadd [#allocation5], 4294965248  ;;  %v647_v0 = vmov 0.0   ;;  %vm648_vm0 = vmmov 0   ;;  %v543_v1 = vld [vmem:[%s750_s1] sm:$0xff]   ;;  %vm83_vm1 = vcmask 1043456   ;;  %v272_v55 = vlaneseq }
  0x27   :  { %506 = vmatprep.subr.bf16.mxu0 %v647_v0  ;;  %510 = vmatprep.mubr.msk.bf16.mxu0 %vm648_vm0, %v647_v0  ;;  %v544_v2 = vld [vmem:[%s750_s1 + $0x8] ss:$0 sps:$4 sm:$0xff]   ;;  %v58_v3 = vld [vmem:[%s749_s0] sm:$0xff]  ;;  %vm79_vm2 = vcmask 195584   ;;  %v547_v8 = vld [vmem:[#allocation2 + $0x10] sm:$0xff]   ;;  %v649_v42 = vmov 0  }
  0x28   :  { %514 = vmatprep.subr.bf16.mxu1 %v647_v0  ;;  %530 = vmatprep.mubr.msk.bf16.mxu1 %vm648_vm0, %v647_v0  ;;  %v85_v4 = vsel %vm83_vm1, %v544_v2, 0  ;;  %v59_v5 = vpack.c.bf16 %v58_v3, %v58_v3  ;;  %v545_v6 = vld [vmem:[#allocation2] sm:$0xff]   ;;  %v546_v7 = vld [vmem:[#allocation2 + $0x8] sm:$0xff]   ;;  %v548_v9 = vld [vmem:[#allocation2 + $0x18] sm:$0xff]   ;;  %v273_v56 = vshrl.u32 %v272_v55, 7 }
  0x29   :  { %507 = vmatpush3.bf16.msra.mxu0 %v543_v1  ;;  %515 = vmatpush3.bf16.msra.mxu1 %v545_v6  ;;  %v549_v10 = vld [vmem:[#allocation2 + $0x20] sm:$0xff]   ;;  %v550_v11 = vld [vmem:[#allocation2 + $0x28] sm:$0xff]   ;;  %v551_v12 = vld [vmem:[#allocation2 + $0x30] sm:$0xff]  }
  0x2a   :  { %508 = vmatprep.subr.bf16.mxu0 %v647_v0  ;;  %516 = vmatprep.subr.bf16.mxu1 %v647_v0  ;;  %v552_v13 = vld [vmem:[#allocation2 + $0x38] sm:$0xff]   ;;  %v461_v14 = vld [vmem:[%s751_s2] ss:$0 sm:$0xff]  ;;  %v555_v26 = vld [vmem:[#allocation4 + $0x4] ss:$8 sps:$4 sm:$0xff]   ;;  %v274_v57 = vsub.s32 0, %v273_v56 }
  0x2b   :  { %v553_v27 = vld [vmem:[#allocation4] ss:$8 sps:$4 sm:$0xff]   ;;  %v558_v28 = vld [vmem:[#allocation4 + $0x14] ss:$8 sps:$4 sm:$0xff]   ;;  %v556_v29 = vld [vmem:[#allocation4 + $0x10] ss:$8 sps:$4 sm:$0xff]  }
  0x2c   :  { %v561_v30 = vld [vmem:[#allocation4 + $0x24] ss:$8 sps:$4 sm:$0xff]   ;;  %v559_v31 = vld [vmem:[#allocation4 + $0x20] ss:$8 sps:$4 sm:$0xff]   ;;  %v564_v32 = vld [vmem:[#allocation4 + $0x34] ss:$8 sps:$4 sm:$0xff]  }
  0x2d   :  { %509 = vmatpush3.bf16.msra.mxu0 %v85_v4  ;;  %517 = vmatpush3.bf16.msra.mxu1 %v546_v7  ;;  %v562_v33 = vld [vmem:[#allocation4 + $0x30] ss:$8 sps:$4 sm:$0xff]   ;;  %v567_v34 = vld [vmem:[#allocation4 + $0x44] ss:$8 sps:$4 sm:$0xff]   ;;  %v565_v35 = vld [vmem:[#allocation4 + $0x40] ss:$8 sps:$4 sm:$0xff]  }
  0x2e   :  { %518 = vmatprep.subr.bf16.mxu1 %v647_v0  ;;  %362 = vmatprep.subr.bf16.mxu0 %v555_v26  ;;  %v570_v36 = vld [vmem:[#allocation4 + $0x54] ss:$8 sps:$4 sm:$0xff]   ;;  %v568_v37 = vld [vmem:[#allocation4 + $0x50] ss:$8 sps:$4 sm:$0xff]   ;;  %v573_v38 = vld [vmem:[#allocation4 + $0x64] ss:$8 sps:$4 sm:$0xff]  }
  0x2f   :  { %v571_v39 = vld [vmem:[#allocation4 + $0x60] ss:$8 sps:$4 sm:$0xff]   ;;  %v576_v40 = vld [vmem:[#allocation4 + $0x74] ss:$8 sps:$4 sm:$0xff]   ;;  %v574_v41 = vld [vmem:[#allocation4 + $0x70] ss:$8 sps:$4 sm:$0xff]  }
  0x30   :  { %511 = vmatmul.mubr.msk.bf16.vlgmr.msra.gmra.mrb[0].mxu0 %vm79_vm2, %v59_v5  ;;  %v466_v43 = vld [vmem:[%s753_s4] ss:$0 sm:$0xff]  ;;  %v278_v59 = vsub.s32 1, %v273_v56 }
  0x31   :  { %519 = vmatpush3.bf16.msra.mxu1 %v547_v8  ;;  %363 = vmatpush1.bf16.msra.mxu0 %v553_v27  ;;  %v270_v58 = vld [vmem:[%s755_s6] sm:$0x3] }
  0x32   :  { %520 = vmatprep.subr.bf16.mxu1 %v647_v0  ;;  %364 = vmatprep.subr.bf16.mxu0 %v558_v28  ;;  %v275_v60 = vrot.slane %v270_v58, %v274_v57  ;;  %v279_v61 = vrot.slane %v270_v58, %v278_v59  ;;  %v492_v1 = vld [vmem:[%s756_s7] ss:$0 sm:$0xff] }
  0x33   :  { %394 = vmatprep.mubr.bf16.mxu0 %v649_v42 }
  0x35   :  { %521 = vmatpush3.bf16.msra.mxu1 %v548_v9  ;;  %365 = vmatpush1.bf16.msra.mxu0 %v556_v29 }
  0x36   :  { %522 = vmatprep.subr.bf16.mxu1 %v647_v0  ;;  %366 = vmatprep.subr.bf16.mxu0 %v561_v30 }
  0x39   :  { %523 = vmatpush3.bf16.msra.mxu1 %v549_v10  ;;  %367 = vmatpush1.bf16.msra.mxu0 %v559_v31 }
  0x3a   :  { %524 = vmatprep.subr.bf16.mxu1 %v647_v0  ;;  %368 = vmatprep.subr.bf16.mxu0 %v564_v32 }
  0x3d   :  { %525 = vmatpush3.bf16.msra.mxu1 %v550_v11  ;;  %369 = vmatpush1.bf16.msra.mxu0 %v562_v33 }
  0x3e   :  { %526 = vmatprep.subr.bf16.mxu1 %v647_v0  ;;  %370 = vmatprep.subr.bf16.mxu0 %v567_v34 }
  0x41   :  { %527 = vmatpush3.bf16.msra.mxu1 %v551_v12  ;;  %371 = vmatpush1.bf16.msra.mxu0 %v565_v35 }
  0x42   :  { %528 = vmatprep.subr.bf16.mxu1 %v647_v0  ;;  %372 = vmatprep.subr.bf16.mxu0 %v570_v36 }
  0x45   :  { %529 = vmatpush3.bf16.msra.mxu1 %v552_v13  ;;  %373 = vmatpush1.bf16.msra.mxu0 %v568_v37 }
  0x46   :  { %374 = vmatprep.subr.bf16.mxu0 %v573_v38 }
  0x49   :  { %375 = vmatpush1.bf16.msra.mxu0 %v571_v39 }
  0x4a   :  { %376 = vmatprep.subr.bf16.mxu0 %v576_v40 }
  0x4d   :  { %377 = vmatpush1.bf16.msra.mxu0 %v574_v41 }
 0x103   :  { %v121_v15 = vpop.f32.mrb[0].mxu0 }
 0x104   :  { %v122_v16 = vadd.f32 %v461_v14, %v121_v15  ;;  %v512_v17 = vpop.f32.mrb[1].mxu0 }
 0x105   :  { %v124_v18 = vpop.f32.mrb[2].mxu0 }
 0x106   :  { %v465_v19 = vmul.f32 -1.442695, %v122_v16  ;;  %v513_v20 = vpop.f32.mrb[3].mxu0 }
 0x107   :  { %v493_v20 = vld [vmem:[%s756_s7 + $0x1] ss:$0 sm:$0xff] }
 0x108   :  { %577 = vpow2.f32 %v465_v19 }
 0x112   :  { %v578_v21 = vpop.eup %577 }
 0x113   :  { %v130_v22 = vadd.f32 1.0, %v578_v21 }
 0x115   :  { %579 = vrcp.f32 %v130_v22 }
 0x11f   :  { %v580_v23 = vpop.eup %579 }
 0x120   :  { %v133_v24 = vmul.f32 %v580_v23, %v122_v16 }
 0x122   :  { %v134_v25 = vpack.c.bf16 %v133_v24, %v133_v24 }
 0x124   :  { %531 = vmatmul.mubr.bf16.vlgmr.msra.gmra.mrb[0].mxu1 %v134_v25 }
 0x1f7   :  { %v240_v44 = vpop.f32.mrb[0].mxu1 }
 0x1f8   :  { %v241_v45 = vadd.f32 %v466_v43, %v240_v44  ;;  %v532_v46 = vpop.f32.mrb[1].mxu1 }
 0x1f9   :  { %v243_v47 = vpop.f32.mrb[2].mxu1 }
 0x1fa   :  { %v475_v48 = vmul.f32 -1.442695, %v241_v45  ;;  %v533_v49 = vpop.f32.mrb[3].mxu1 }
 0x1fc   :  { %581 = vpow2.f32 %v475_v48 }
 0x206   :  { %v582_v50 = vpop.eup %581 }
 0x207   :  { %v249_v51 = vadd.f32 1.0, %v582_v50 }
 0x209   :  { %583 = vrcp.f32 %v249_v51 }
 0x213   :  { %v584_v52 = vpop.eup %583 }
 0x214   :  { %v252_v53 = vmul.f32 %v584_v52, %v241_v45 }
 0x216   :  { %v253_v54 = vpack.c.bf16 %v252_v53, %v252_v53 }
 0x218   :  { %395 = vmatmul.mubr.bf16.vlgmr.msra.gmra.mrb[4].mxu0 %v253_v54 }
 0x2eb   :  { %v396_v62 = vpop.f32.mrb[4].mxu0 }
 0x2ec   :  { %v397_v63 = vadd.f32 %v396_v62, %v275_v60  ;;  %v398_v0 = vpop.f32.mrb[5].mxu0 }
 0x2ed   :  { %v399_v2 = vadd.f32 %v398_v0, %v279_v61  ;;  %v400_v3 = vpop.f32.mrb[6].mxu0 }
 0x2ee   :  { %453 = vst [vmem:[%s757_s8] sm:$0xff] %v397_v63  ;;  %v401_v4 = vpop.f32.mrb[7].mxu0 }
 0x2ef   :  { %v409_v5 = vsub.f32 %v492_v1, %v399_v2 }
 0x2f1   :  { %v413_v6 = vand.u32 2147483647, %v409_v5  ;;  %v410_v17 = vmax.f32 %v409_v5, 0.0  ;;  %vm411_vm4 = vcmp.ne.f32.partialorder %v409_v5, %v409_v5 }
 0x2f3   :  { %v414_v7 = vsub.f32 0.0, %v413_v6 }
 0x2f5   :  { %v415_v8 = vmul.f32 1.442695, %v414_v7 }
 0x2f7   :  { %585 = vpow2.f32 %v415_v8 }
 0x301   :  { %v586_v9 = vpop.eup %585 }
 0x302   :  { %v417_v10 = vadd.f32 1.0, %v586_v9  ;;  %v420_v11 = vmul.f32 -0.5, %v586_v9  ;;  %v423_v13 = vand.u32 2147483647, %v586_v9 }
 0x304   :  { %587 = vlog2.f32 %v417_v10  ;;  %v421_v12 = vadd.f32 1.0, %v420_v11  ;;  %vm424_vm3 = vcmp.lt.f32.partialorder %v423_v13, 0.0004427343 }
 0x306   :  { %v422_v16 = vmul.f32 %v586_v9, %v421_v12 }
 0x30e   :  { %v588_v14 = vpop.eup %587 }
 0x30f   :  { %v419_v15 = vmul.f32 0.6931472, %v588_v14 }
 0x311   :  { %v425_v18 = vsel %vm424_vm3, %v422_v16, %v419_v15 }
 0x312   :  { %v426_v19 = vadd.f32 %v425_v18, %v410_v17 }
 0x314   :  { %v427_v21 = vsel %vm411_vm4, %v409_v5, %v426_v19 }
 0x315   :  { %v428_v22 = vsub.f32 %v492_v1, %v427_v21 }
 0x317   :  { %v433_v23 = vsub.f32 %v428_v22, %v493_v20 }
 0x319   :  { %v437_v24 = vand.u32 2147483647, %v433_v23  ;;  %v434_v35 = vmax.f32 %v433_v23, 0.0  ;;  %vm435_vm6 = vcmp.ne.f32.partialorder %v433_v23, %v433_v23 }
 0x31b   :  { %v438_v25 = vsub.f32 0.0, %v437_v24 }
 0x31d   :  { %v439_v26 = vmul.f32 1.442695, %v438_v25 }
 0x31f   :  { %589 = vpow2.f32 %v439_v26 }
 0x329   :  { %v590_v27 = vpop.eup %589 }
 0x32a   :  { %v441_v28 = vadd.f32 1.0, %v590_v27  ;;  %v444_v29 = vmul.f32 -0.5, %v590_v27  ;;  %v447_v31 = vand.u32 2147483647, %v590_v27 }
 0x32c   :  { %591 = vlog2.f32 %v441_v28  ;;  %v445_v30 = vadd.f32 1.0, %v444_v29  ;;  %vm448_vm5 = vcmp.lt.f32.partialorder %v447_v31, 0.0004427343 }
 0x32e   :  { %v446_v34 = vmul.f32 %v590_v27, %v445_v30 }
 0x336   :  { %v592_v32 = vpop.eup %591 }
 0x337   :  { %v443_v33 = vmul.f32 0.6931472, %v592_v32 }
 0x339   :  { %v449_v36 = vsel %vm448_vm5, %v446_v34, %v443_v33 }
 0x33a   :  { %v450_v37 = vadd.f32 %v449_v36, %v434_v35 }
 0x33c   :  { %v451_v38 = vsel %vm435_vm6, %v433_v23, %v450_v37 }
 0x33d   :  { %v452_v39 = vadd.f32 %v493_v20, %v451_v38 }
 0x33f   :  { %454 = vst [vmem:[%s757_s8 + $0x8] sm:$0xff] %v452_v39 }
 0x340   :  { %459 = vsyncpa [#allocation3], 1 }
 0x341   :  { %460 = vsyncpa [#allocation5], 1 }

</bundles_post_ra>
